<compile_context>
chip_gen: v5e
topology: v5e:2x2
jax: 0.10.0
libtpu: 0.0.40
codegen_flags: <defaults>
</compile_context>

<pallas_src>
import functools

import jax
import jax.numpy as jnp
from jax.experimental import pallas as pl
from jax.experimental.pallas import tpu as pltpu

IN_DIM = 768
HID_DIM = 128


def _round_up(v, m):
    return (v + m - 1) // m * m


def _mlp_kernel(x_ref, w1_ref, b1_ref, w2_ref, b2_ref, o_ref):
    # x_ref:  (tm, 768)          native dtype (f32 by default); cast in-kernel
    # w1_ref: (768, 128)         compute dtype (bf16)
    # b1_ref: (1, 128)           f32
    # w2_ref: (128, feature_dim) compute dtype (bf16)
    # b2_ref: (1, feature_dim)   f32
    # o_ref:  (tm, feature_dim)  out dtype (f32 by default)
    x = x_ref[...].astype(w1_ref.dtype)                 # in-kernel cast (VPU, hidden)
    h = jnp.dot(x, w1_ref[...], preferred_element_type=jnp.float32)
    h = jnp.maximum(h + b1_ref[...], 0.0)               # bias + ReLU in f32
    # Dropout(p) in eval mode == identity.
    y = jnp.dot(h.astype(w2_ref.dtype), w2_ref[...],
                preferred_element_type=jnp.float32)
    o_ref[...] = (y + b2_ref[...]).astype(o_ref.dtype)


@functools.partial(
    jax.jit,
    static_argnames=("tm", "compute_dtype", "out_dtype", "training", "dropout_p"))
def word_emb_transformers_forward(x, w1, b1, w2, b2, *, tm=1024,
                                  compute_dtype=jnp.bfloat16,
                                  out_dtype=jnp.float32,
                                  training=False, dropout_p=0.0):
    """x: [..., 768] -> [..., feature_dim].

    w1: [768, 128], b1: [128], w2: [128, feature_dim], b2: [feature_dim]
    (weights stored as [in, out], i.e. transpose of torch's [out, in]).
    Matmuls run in `compute_dtype` (bf16) with f32 accumulation; bias/ReLU in f32.
    """
    if training and dropout_p > 0.0:
        # TODO(synk): implement training-mode dropout with pltpu.prng_seed/prng_random_bits.
        raise NotImplementedError(
            "WordEmbTransformers kernel implements eval-mode (identity) dropout only.")

    orig_shape = x.shape
    feature_dim = w2.shape[1]

    x2 = x.reshape(-1, IN_DIM)                 # no dtype cast here (done in-kernel)
    m = x2.shape[0]

    # Row tile: multiple of 16 (bf16 sublane packing); ragged last block is
    # masked by Pallas, so no host-side padding of x.
    tm_eff = min(tm, _round_up(m, 16))
    # Keep >= 2 row blocks for medium/large M so the "parallel" axis can be
    # split across both v7x TensorCores.
    if m > 512:
        tm_eff = min(tm_eff, _round_up(pl.cdiv(m, 2), 16))
    grid_m = pl.cdiv(m, tm_eff)

    w1c = w1.astype(compute_dtype)
    w2c = w2.astype(compute_dtype)
    b1_2d = b1.reshape(1, HID_DIM).astype(jnp.float32)
    b2_2d = b2.reshape(1, feature_dim).astype(jnp.float32)

    xbytes = jnp.dtype(x.dtype).itemsize
    cbytes = jnp.dtype(compute_dtype).itemsize
    obytes = jnp.dtype(out_dtype).itemsize

    cost = pl.CostEstimate(
        flops=2 * m * (IN_DIM * HID_DIM + HID_DIM * feature_dim),
        transcendentals=0,
        bytes_accessed=(m * IN_DIM * xbytes                 # x read (native dtype)
                        + IN_DIM * HID_DIM * cbytes         # W1
                        + HID_DIM * feature_dim * cbytes    # W2
                        + (HID_DIM + feature_dim) * 4       # biases
                        + m * feature_dim * obytes),        # output write (unpadded)
    )

    # Explicit scoped-VMEM limit: double-buffered x/out tiles + resident weights
    # + headroom, clamped under v7x's 64 MiB physical VMEM.
    vmem_est = (2 * tm_eff * IN_DIM * xbytes
                + 2 * tm_eff * feature_dim * obytes
                + 2 * (IN_DIM * HID_DIM + HID_DIM * feature_dim) * cbytes
                + 2 * (HID_DIM + feature_dim) * 4)
    vmem_limit = int(min(max(vmem_est + (8 << 20), 32 << 20), 60 << 20))

    out = pl.pallas_call(
        _mlp_kernel,
        out_shape=jax.ShapeDtypeStruct((m, feature_dim), out_dtype),
        grid_spec=pltpu.PrefetchScalarGridSpec(
            num_scalar_prefetch=0,
            grid=(grid_m,),
            in_specs=[
                pl.BlockSpec((tm_eff, IN_DIM), lambda i: (i, 0)),        # x tile
                pl.BlockSpec((IN_DIM, HID_DIM), lambda i: (0, 0)),       # W1 (resident)
                pl.BlockSpec((1, HID_DIM), lambda i: (0, 0)),            # b1
                pl.BlockSpec((HID_DIM, feature_dim), lambda i: (0, 0)),  # W2 (resident)
                pl.BlockSpec((1, feature_dim), lambda i: (0, 0)),        # b2
            ],
            # Last block dim == full array dim (feature_dim), so no 128-pad needed.
            out_specs=pl.BlockSpec((tm_eff, feature_dim), lambda i: (i, 0)),
        ),
        compiler_params=pltpu.CompilerParams(
            dimension_semantics=("parallel",),
            vmem_limit_bytes=vmem_limit),
        cost_estimate=cost,
    )(x2, w1c, b1_2d, w2c, b2_2d)

    return out.reshape(*orig_shape[:-1], feature_dim)


def _reference(x, w1, b1, w2, b2, compute_dtype=jnp.bfloat16):
    """Pure-JAX reference with the same dtype semantics as the kernel."""
    xc = x.astype(compute_dtype).astype(jnp.float32)
    w1c = w1.astype(compute_dtype).astype(jnp.float32)
    w2c = w2.astype(compute_dtype).astype(jnp.float32)
    h = jnp.maximum(xc @ w1c + b1.astype(jnp.float32), 0.0)
    h = h.astype(compute_dtype).astype(jnp.float32)
    return h @ w2c + b2.astype(jnp.float32)


if __name__ == "__main__":
    feature_dim = 32           # module's self.feature_dim
    batch, seq = 2, 8          # small example; x: [2, 8, 768]

    key = jax.random.PRNGKey(0)
    kx, k1, k2, k3, k4 = jax.random.split(key, 5)

    x = jax.random.normal(kx, (batch, seq, IN_DIM), dtype=jnp.float32)

    # Deterministic synthetic parameters (nn.Linear shapes, stored as [in, out]).
    w1 = jax.random.normal(k1, (IN_DIM, HID_DIM), dtype=jnp.float32) * 0.02
    b1 = jax.random.normal(k2, (HID_DIM,), dtype=jnp.float32) * 0.02
    w2 = jax.random.normal(k3, (HID_DIM, feature_dim), dtype=jnp.float32) * 0.02
    b2 = jax.random.normal(k4, (feature_dim,), dtype=jnp.float32) * 0.02

    y = word_emb_transformers_forward(x, w1, b1, w2, b2)
    y = jax.block_until_ready(y)

    y_ref = _reference(x.reshape(-1, IN_DIM), w1, b1, w2, b2).reshape(
        batch, seq, feature_dim)
    assert y.shape == (batch, seq, feature_dim), y.shape
    assert y.dtype == jnp.float32, y.dtype
    assert jnp.allclose(y.astype(jnp.float32), y_ref, atol=1e-3, rtol=1e-3), float(
        jnp.max(jnp.abs(y.astype(jnp.float32) - y_ref)))

    print("KERNEL_OK")
</pallas_src>

<mosaic_0001>
module attributes {stable_mosaic.version = 11 : i64} {
  func.func @_mlp_kernel(%arg0: i32, %arg1: memref<16x768xf32, #tpu.memory_space<vmem>>, %arg2: memref<768x128xbf16, #tpu.memory_space<vmem>>, %arg3: memref<1x128xf32, #tpu.memory_space<vmem>>, %arg4: memref<128x32xbf16, #tpu.memory_space<vmem>>, %arg5: memref<1x32xf32, #tpu.memory_space<vmem>>, %arg6: memref<16x32xf32, #tpu.memory_space<vmem>>) attributes {dimension_semantics = [#tpu.dimension_semantics<parallel>], iteration_bounds = array<i64: 1>, scalar_prefetch = 0 : i64, scratch_operands = 0 : i64, tpu.core_type = #tpu.core_type<tc>, window_params = [{transform_indices = @transform_0, window_bounds = array<i64: 16, 768>}, {pipeline_mode = #tpu.pipeline_mode<synchronous>, transform_indices = @transform_1, window_bounds = array<i64: 768, 128>}, {pipeline_mode = #tpu.pipeline_mode<synchronous>, transform_indices = @transform_2, window_bounds = array<i64: 1, 128>}, {pipeline_mode = #tpu.pipeline_mode<synchronous>, transform_indices = @transform_3, window_bounds = array<i64: 128, 32>}, {pipeline_mode = #tpu.pipeline_mode<synchronous>, transform_indices = @transform_4, window_bounds = array<i64: 1, 32>}, {transform_indices = @transform_5, window_bounds = array<i64: 16, 32>}]} {
    %c0 = arith.constant 0 : index
    %c0_0 = arith.constant 0 : index
    %0 = vector.load %arg1[%c0, %c0_0] : memref<16x768xf32, #tpu.memory_space<vmem>>, vector<16x768xf32>
    %1 = arith.truncf %0 : vector<16x768xf32> to vector<16x768xbf16>
    %c0_1 = arith.constant 0 : index
    %c0_2 = arith.constant 0 : index
    %2 = vector.load %arg2[%c0_1, %c0_2] : memref<768x128xbf16, #tpu.memory_space<vmem>>, vector<768x128xbf16>
    %cst = arith.constant dense<0.000000e+00> : vector<16x128xf32>
    %3 = tpu.matmul %1, %2, %cst {dimension_numbers = #tpu.dot_dimension_numbers<[1], [0], [0], [1], [0, 0, 1, 1], [], []>} : vector<16x768xbf16>, vector<768x128xbf16>, vector<16x128xf32> -> vector<16x128xf32>
    %c0_3 = arith.constant 0 : index
    %c0_4 = arith.constant 0 : index
    %4 = vector.load %arg3[%c0_3, %c0_4] : memref<1x128xf32, #tpu.memory_space<vmem>>, vector<1x128xf32>
    %5 = vector.broadcast %4 : vector<1x128xf32> to vector<16x128xf32>
    %6 = arith.addf %3, %5 : vector<16x128xf32>
    %cst_5 = arith.constant 0.000000e+00 : f32
    %7 = vector.broadcast %cst_5 : f32 to vector<16x128xf32>
    %8 = arith.maximumf %6, %7 : vector<16x128xf32>
    %9 = arith.truncf %8 : vector<16x128xf32> to vector<16x128xbf16>
    %c0_6 = arith.constant 0 : index
    %c0_7 = arith.constant 0 : index
    %10 = vector.load %arg4[%c0_6, %c0_7] : memref<128x32xbf16, #tpu.memory_space<vmem>>, vector<128x32xbf16>
    %cst_8 = arith.constant dense<0.000000e+00> : vector<16x32xf32>
    %11 = tpu.matmul %9, %10, %cst_8 {dimension_numbers = #tpu.dot_dimension_numbers<[1], [0], [0], [1], [0, 0, 1, 1], [], []>} : vector<16x128xbf16>, vector<128x32xbf16>, vector<16x32xf32> -> vector<16x32xf32>
    %c0_9 = arith.constant 0 : index
    %c0_10 = arith.constant 0 : index
    %12 = vector.load %arg5[%c0_9, %c0_10] : memref<1x32xf32, #tpu.memory_space<vmem>>, vector<1x32xf32>
    %13 = vector.broadcast %12 : vector<1x32xf32> to vector<16x32xf32>
    %14 = arith.addf %11, %13 : vector<16x32xf32>
    %c0_11 = arith.constant 0 : index
    %c0_12 = arith.constant 0 : index
    %15 = vector.load %arg6[%c0_11, %c0_12] : memref<16x32xf32, #tpu.memory_space<vmem>>, vector<16x32xf32>
    tpu.vector_store %arg6[%c0_11, %c0_12], %14 {strides = array<i32>} : memref<16x32xf32, #tpu.memory_space<vmem>>, vector<16x32xf32>,
    return
  }
  func.func @transform_0(%arg0: i32) -> (i32, i32) {
    %c0_i32 = arith.constant 0 : i32
    %c0_i32_0 = arith.constant 0 : i32
    return %arg0, %c0_i32 : i32, i32
  }
  func.func @transform_1(%arg0: i32) -> (i32, i32) {
    %c0_i32 = arith.constant 0 : i32
    %c0_i32_0 = arith.constant 0 : i32
    %c0_i32_1 = arith.constant 0 : i32
    return %c0_i32, %c0_i32_0 : i32, i32
  }
  func.func @transform_2(%arg0: i32) -> (i32, i32) {
    %c0_i32 = arith.constant 0 : i32
    %c0_i32_0 = arith.constant 0 : i32
    %c0_i32_1 = arith.constant 0 : i32
    return %c0_i32, %c0_i32_0 : i32, i32
  }
  func.func @transform_3(%arg0: i32) -> (i32, i32) {
    %c0_i32 = arith.constant 0 : i32
    %c0_i32_0 = arith.constant 0 : i32
    %c0_i32_1 = arith.constant 0 : i32
    return %c0_i32, %c0_i32_0 : i32, i32
  }
  func.func @transform_4(%arg0: i32) -> (i32, i32) {
    %c0_i32 = arith.constant 0 : i32
    %c0_i32_0 = arith.constant 0 : i32
    %c0_i32_1 = arith.constant 0 : i32
    return %c0_i32, %c0_i32_0 : i32, i32
  }
  func.func @transform_5(%arg0: i32) -> (i32, i32) {
    %c0_i32 = arith.constant 0 : i32
    %c0_i32_0 = arith.constant 0 : i32
    return %arg0, %c0_i32 : i32, i32
  }
}

</mosaic_0001>

<bundles_post_ra>
// kernel: word_emb_transformers_forward.1
= control target key start
LH: loop header
LB: loop body
LE: loop exit
PB: predicated region body
PF: predicated region fallthrough
CT: control target
= control target key end

     0   :  { %s1174_s0 = inlined_call_operand.vmem [shape: f32[16,768], index: 0, kind: input, shape index: {}]   ;;  %s1175_s1 = inlined_call_operand.vmem [shape: bf16[768,128], index: 1, kind: input, shape index: {}]   ;;  %s1176_s2 = inlined_call_operand.vmem [shape: f32[1,128], index: 2, kind: input, shape index: {}]   ;;  %s1177_s3 = inlined_call_operand.vmem [shape: bf16[128,32], index: 3, kind: input, shape index: {}]   ;;  %s1178_s4 = inlined_call_operand.vmem [shape: f32[1,32], index: 4, kind: input, shape index: {}]   ;;  %s1179_s5 = inlined_call_operand.hbm [shape: f32[16,32], index: 5, kind: output, shape index: {}]  }
   0x1   :  { %v848_v0 = vld [vmem:[%s1175_s1 + $0x38] sm:$0xff]  ;;  %v847_v4 = vld [vmem:[%s1175_s1 + $0x30] sm:$0xff]  ;;  %v846_v8 = vld [vmem:[%s1175_s1 + $0x28] sm:$0xff] }
   0x2   :  { %v856_v1 = vld [vmem:[%s1175_s1 + $0x78] sm:$0xff]  ;;  %427 = vmatpush.bf16.msra.mxu0 %v848_v0  ;;  %v855_v5 = vld [vmem:[%s1175_s1 + $0x70] sm:$0xff]  ;;  %v854_v9 = vld [vmem:[%s1175_s1 + $0x68] sm:$0xff] }
   0x3   :  { %v864_v2 = vld [vmem:[%s1175_s1 + $0xb8] sm:$0xff]  ;;  %441 = vmatpush.bf16.msra.mxu1 %v856_v1  ;;  %v863_v6 = vld [vmem:[%s1175_s1 + $0xb0] sm:$0xff]  ;;  %v862_v10 = vld [vmem:[%s1175_s1 + $0xa8] sm:$0xff] }
   0x4   :  { %v872_v3 = vld [vmem:[%s1175_s1 + $0xf8] sm:$0xff]  ;;  %455 = vmatpush.bf16.msra.mxu2 %v864_v2  ;;  %v871_v7 = vld [vmem:[%s1175_s1 + $0xf0] sm:$0xff]  ;;  %v870_v11 = vld [vmem:[%s1175_s1 + $0xe8] sm:$0xff] }
   0x5   :  { %469 = vmatpush.bf16.msra.mxu3 %v872_v3  ;;  %v845_v12 = vld [vmem:[%s1175_s1 + $0x20] sm:$0xff]  ;;  %v844_v16 = vld [vmem:[%s1175_s1 + $0x18] sm:$0xff]  ;;  %v843_v20 = vld [vmem:[%s1175_s1 + $0x10] sm:$0xff] }
   0x6   :  { %428 = vmatpush.bf16.msra.mxu0 %v847_v4  ;;  %v853_v13 = vld [vmem:[%s1175_s1 + $0x60] sm:$0xff]  ;;  %v852_v17 = vld [vmem:[%s1175_s1 + $0x58] sm:$0xff]  ;;  %v851_v21 = vld [vmem:[%s1175_s1 + $0x50] sm:$0xff] }
   0x7   :  { %442 = vmatpush.bf16.msra.mxu1 %v855_v5  ;;  %v861_v14 = vld [vmem:[%s1175_s1 + $0xa0] sm:$0xff]  ;;  %v860_v18 = vld [vmem:[%s1175_s1 + $0x98] sm:$0xff] }
   0x8   :  { %456 = vmatpush.bf16.msra.mxu2 %v863_v6  ;;  %v869_v15 = vld [vmem:[%s1175_s1 + $0xe0] sm:$0xff]  ;;  %v868_v19 = vld [vmem:[%s1175_s1 + $0xd8] sm:$0xff] }
   0x9   :  { %470 = vmatpush.bf16.msra.mxu3 %v871_v7 }
   0xa   :  { %429 = vmatpush.bf16.msra.mxu0 %v846_v8 }
   0xb   :  { %443 = vmatpush.bf16.msra.mxu1 %v854_v9 }
   0xc   :  { %457 = vmatpush.bf16.msra.mxu2 %v862_v10 }
   0xd   :  { %471 = vmatpush.bf16.msra.mxu3 %v870_v11 }
   0xe   :  { %430 = vmatpush.bf16.msra.mxu0 %v845_v12 }
   0xf   :  { %444 = vmatpush.bf16.msra.mxu1 %v853_v13 }
  0x10   :  { %458 = vmatpush.bf16.msra.mxu2 %v861_v14 }
  0x11   :  { %472 = vmatpush.bf16.msra.mxu3 %v869_v15 }
  0x12   :  { %431 = vmatpush.bf16.msra.mxu0 %v844_v16 }
  0x13   :  { %445 = vmatpush.bf16.msra.mxu1 %v852_v17 }
  0x14   :  { %10 = vsyncpa [#allocation3], 0  ;;  %459 = vmatpush.bf16.msra.mxu2 %v860_v18  ;;  %v859_v22 = vld [vmem:[%s1175_s1 + $0x90] sm:$0xff]  ;;  %v842_v24 = vld [vmem:[%s1175_s1 + $0x8] sm:$0xff]  ;;  %vm596_vm0 = vcmask 261120   ;;  %s928_s29 = smov [#allocation2]  }
  0x15   :  { %473 = vmatpush.bf16.msra.mxu3 %v868_v19  ;;  %v867_v23 = vld [vmem:[%s1175_s1 + $0xd0] sm:$0xff]  ;;  %v850_v25 = vld [vmem:[%s1175_s1 + $0x48] sm:$0xff]  ;;  %v841_v28 = vld [vmem:[%s1175_s1] sm:$0xff]  ;;  %s603_s30 = sshll.u32 %s928_s29, 4  ;;  %s605_s8 = sshll.u32 %s1179_s5, 4  ;;  %s604_s30 = int_to_ptr.vmem [resolvable:$true] %s603_s30  ;;  %s606_s8 = int_to_ptr.hbm [resolvable:$true] %s605_s8 }
  0x16   :  { %432 = vmatpush.bf16.msra.mxu0 %v843_v20  ;;  %v858_v26 = vld [vmem:[%s1175_s1 + $0x88] sm:$0xff]  ;;  %v849_v29 = vld [vmem:[%s1175_s1 + $0x40] sm:$0xff]  ;;  %v27_v31 = vld [vmem:[%s1174_s0 + $0x30] sm:$0xff]  ;;  %s929_s9 = smov 128   ;;  %s930_s10 = smov 8  }
  0x17   :  { %446 = vmatpush.bf16.msra.mxu1 %v851_v21  ;;  %v866_v27 = vld [vmem:[%s1175_s1 + $0xc8] sm:$0xff]  ;;  %v21_v30 = vld [vmem:[%s1174_s0] sm:$0xff]  ;;  %v28_v33 = vld [vmem:[%s1174_s0 + $0x38] sm:$0xff] }
  0x18   :  { %460 = vmatpush.bf16.msra.mxu2 %v859_v22  ;;  %v22_v32 = vld [vmem:[%s1174_s0 + $0x8] sm:$0xff]  ;;  %v880_v34 = vld [vmem:[%s1175_s1 + $0x138] sm:$0xff]  ;;  %v857_v36 = vld [vmem:[%s1175_s1 + $0x80] sm:$0xff]  ;;  %v33_v40 = vpack.c.bf16 %v27_v31, %v21_v30 }
  0x19   :  { %474 = vmatpush.bf16.msra.mxu3 %v867_v23  ;;  %v888_v35 = vld [vmem:[%s1175_s1 + $0x178] sm:$0xff]  ;;  %v865_v37 = vld [vmem:[%s1175_s1 + $0xc0] sm:$0xff]  ;;  %v23_v38 = vld [vmem:[%s1174_s0 + $0x10] sm:$0xff]  ;;  %v34_v43 = vpack.c.bf16 %v28_v33, %v22_v32 }
  0x1a   :  { %433 = vmatpush.bf16.msra.mxu0 %v842_v24  ;;  %v29_v39 = vld [vmem:[%s1174_s0 + $0x40] sm:$0xff]  ;;  %v24_v41 = vld [vmem:[%s1174_s0 + $0x18] sm:$0xff]  ;;  %v30_v42 = vld [vmem:[%s1174_s0 + $0x48] sm:$0xff] }
  0x1b   :  { %447 = vmatpush.bf16.msra.mxu1 %v850_v25  ;;  %v879_v44 = vld [vmem:[%s1175_s1 + $0x130] sm:$0xff]  ;;  %v35_v46 = vpack.c.bf16 %v29_v39, %v23_v38  ;;  %v36_v47 = vpack.c.bf16 %v30_v42, %v24_v41  ;;  %v878_v48 = vld [vmem:[%s1175_s1 + $0x128] sm:$0xff]  ;;  %v877_v50 = vld [vmem:[%s1175_s1 + $0x120] sm:$0xff] }
  0x1c   :  { %461 = vmatpush.bf16.msra.mxu2 %v858_v26  ;;  %v887_v45 = vld [vmem:[%s1175_s1 + $0x170] sm:$0xff]  ;;  %v886_v49 = vld [vmem:[%s1175_s1 + $0x168] sm:$0xff]  ;;  %v885_v51 = vld [vmem:[%s1175_s1 + $0x160] sm:$0xff] }
  0x1d   :  { %475 = vmatpush.bf16.msra.mxu3 %v866_v27  ;;  %v876_v52 = vld [vmem:[%s1175_s1 + $0x118] sm:$0xff]  ;;  %v875_v54 = vld [vmem:[%s1175_s1 + $0x110] sm:$0xff]  ;;  %v874_v56 = vld [vmem:[%s1175_s1 + $0x108] sm:$0xff] }
  0x1e   :  { %434 = vmatpush.bf16.msra.mxu0 %v841_v28  ;;  %v884_v53 = vld [vmem:[%s1175_s1 + $0x158] sm:$0xff]  ;;  %v883_v55 = vld [vmem:[%s1175_s1 + $0x150] sm:$0xff]  ;;  %v882_v57 = vld [vmem:[%s1175_s1 + $0x148] sm:$0xff] }
  0x1f   :  { %448 = vmatpush.bf16.msra.mxu1 %v849_v29  ;;  %v873_v58 = vld [vmem:[%s1175_s1 + $0x100] sm:$0xff]  ;;  %v31_v61 = vld [vmem:[%s1174_s0 + $0x50] sm:$0xff]  ;;  %v26_v62 = vld [vmem:[%s1174_s0 + $0x28] sm:$0xff] }
  0x20   :  { %462 = vmatpush.bf16.msra.mxu2 %v857_v36  ;;  %v881_v59 = vld [vmem:[%s1175_s1 + $0x140] sm:$0xff]  ;;  %v32_v63 = vld [vmem:[%s1174_s0 + $0x58] sm:$0xff]  ;;  %v895_v3 = vld [vmem:[%s1177_s3 + $0x30] sm:$0xff] }
  0x21   :  { %476 = vmatpush.bf16.msra.mxu3 %v865_v37  ;;  %435 = vmatmul.bf16.vlgmr.msra.gmra.mxu0 %v33_v40  ;;  %v25_v60 = vld [vmem:[%s1174_s0 + $0x20] sm:$0xff]  ;;  %v38_v1 = vpack.c.bf16 %v32_v63, %v26_v62  ;;  %v896_v2 = vld [vmem:[%s1177_s3 + $0x38] sm:$0xff]  ;;  %v894_v4 = vld [vmem:[%s1177_s3 + $0x28] sm:$0xff] }
  0x22   :  { %483 = vmatpush.bf16.msrb.mxu0 %v880_v34  ;;  %449 = vmatmul.bf16.vlgmr.msra.gmra.mxu1 %v34_v43  ;;  %v37_v0 = vpack.c.bf16 %v31_v61, %v25_v60  ;;  %v893_v5 = vld [vmem:[%s1177_s3 + $0x20] sm:$0xff]  ;;  %v892_v6 = vld [vmem:[%s1177_s3 + $0x18] sm:$0xff]  ;;  %v891_v7 = vld [vmem:[%s1177_s3 + $0x10] sm:$0xff] }
  0x23   :  { %497 = vmatpush.bf16.msrb.mxu1 %v888_v35  ;;  %463 = vmatmul.bf16.vlgmr.msra.gmra.mxu2 %v35_v46  ;;  %v890_v8 = vld [vmem:[%s1177_s3 + $0x8] sm:$0xff]  ;;  %v889_v9 = vld [vmem:[%s1177_s3] sm:$0xff] }
  0x24   :  { %477 = vmatmul.bf16.vlgmr.msra.gmra.mxu3 %v36_v47  ;;  %582 = vmatpush.bf16.msrb.mxu2 %v896_v2  ;;  %v900_v12 = vld [vmem:[%s1176_s2] ss:$0 sm:$0xff] }
  0x25   :  { %v901_v38 = vld [vmem:[%s1178_s4] ss:$0 sm:$0xff] }
  0x26   :  { %484 = vmatpush.bf16.msrb.mxu0 %v879_v44 }
  0x27   :  { %498 = vmatpush.bf16.msrb.mxu1 %v887_v45 }
  0x28   :  { %583 = vmatpush.bf16.msrb.mxu2 %v895_v3 }
  0x2a   :  { %485 = vmatpush.bf16.msrb.mxu0 %v878_v48 }
  0x2b   :  { %499 = vmatpush.bf16.msrb.mxu1 %v886_v49 }
  0x2c   :  { %584 = vmatpush.bf16.msrb.mxu2 %v894_v4 }
  0x2e   :  { %486 = vmatpush.bf16.msrb.mxu0 %v877_v50 }
  0x2f   :  { %500 = vmatpush.bf16.msrb.mxu1 %v885_v51 }
  0x30   :  { %585 = vmatpush.bf16.msrb.mxu2 %v893_v5 }
  0x32   :  { %487 = vmatpush.bf16.msrb.mxu0 %v876_v52 }
  0x33   :  { %501 = vmatpush.bf16.msrb.mxu1 %v884_v53 }
  0x34   :  { %586 = vmatpush.bf16.msrb.mxu2 %v892_v6 }
  0x36   :  { %488 = vmatpush.bf16.msrb.mxu0 %v875_v54 }
  0x37   :  { %502 = vmatpush.bf16.msrb.mxu1 %v883_v55 }
  0x38   :  { %587 = vmatpush.bf16.msrb.mxu2 %v891_v7 }
  0x3a   :  { %489 = vmatpush.bf16.msrb.mxu0 %v874_v56 }
  0x3b   :  { %503 = vmatpush.bf16.msrb.mxu1 %v882_v57 }
  0x3c   :  { %588 = vmatpush.bf16.msrb.mxu2 %v890_v8 }
  0x3e   :  { %490 = vmatpush.bf16.msrb.mxu0 %v873_v58 }
  0x3f   :  { %504 = vmatpush.bf16.msrb.mxu1 %v881_v59 }
  0x40   :  { %589 = vmatpush.bf16.msrb.mxu2 %v889_v9 }
  0x41   :  { %491 = vmatmul.bf16.vlgmr.msrb.gmra.mxu0 %v37_v0 }
  0x42   :  { %505 = vmatmul.bf16.vlgmr.msrb.gmra.mxu1 %v38_v1 }
  0x9e   :  { %v436_v10 = vpop.f32.mrf.mxu0 }
  0x9f   :  { %v450_v11 = vpop.f32.mrf.mxu1  ;;  %v437_v14 = vadd.f32 %v900_v12, %v436_v10 }
  0xa1   :  { %v451_v18 = vadd.f32 %v450_v11, %v437_v14 }
  0xa6   :  { %v464_v13 = vpop.f32.mrf.mxu2  ;;  %v438_v15 = vpop.f32.mrf.mxu0 }
  0xa7   :  { %v452_v16 = vpop.f32.mrf.mxu1  ;;  %v478_v17 = vpop.f32.mrf.mxu3  ;;  %v439_v19 = vadd.f32 %v900_v12, %v438_v15  ;;  %v465_v20 = vadd.f32 %v464_v13, %v451_v18 }
  0xa9   :  { %v453_v21 = vadd.f32 %v452_v16, %v439_v19  ;;  %v479_v25 = vadd.f32 %v478_v17, %v465_v20 }
  0xae   :  { %v466_v22 = vpop.f32.mrf.mxu2 }
  0xaf   :  { %v467_v26 = vadd.f32 %v466_v22, %v453_v21  ;;  %v480_v27 = vpop.f32.mrf.mxu3 }
  0xb1   :  { %v481_v29 = vadd.f32 %v480_v27, %v467_v26 }
  0xbe   :  { %v492_v23 = vpop.f32.mrf.mxu0 }
  0xbf   :  { %v506_v24 = vpop.f32.mrf.mxu1  ;;  %v493_v28 = vadd.f32 %v492_v23, %v479_v25 }
  0xc1   :  { %v507_v31 = vadd.f32 %v506_v24, %v493_v28 }
  0xc3   :  { %v511_v35 = vmax.f32 %v507_v31, 0.0 }
  0xc6   :  { %v494_v30 = vpop.f32.mrf.mxu0 }
  0xc7   :  { %v495_v32 = vadd.f32 %v494_v30, %v481_v29  ;;  %v508_v33 = vpop.f32.mrf.mxu1 }
  0xc9   :  { %v509_v34 = vadd.f32 %v508_v33, %v495_v32 }
  0xcb   :  { %v512_v36 = vmax.f32 %v509_v34, 0.0 }
  0xcd   :  { %v513_v37 = vpack.c.bf16 %v512_v36, %v511_v35 }
  0xcf   :  { %590 = vmatmul.bf16.vlgmr.msrb.gmra.mxu2 %v513_v37 }
 0x152   :  { %v591_v39 = vpop.f32.mrf.mxu2 }
 0x153   :  { %v592_v40 = vadd.f32 %v901_v38, %v591_v39 }
 0x155   :  { %597 = vst.msk [vmem:[#allocation2] sm:$0xff] %vm596_vm0, %v592_v40 }
 0x15a   :  { %v593_v41 = vpop.f32.mrf.mxu2 }
 0x15b   :  { %v594_v42 = vadd.f32 %v901_v38, %v593_v41 }
 0x15d   :  { %598 = vst.msk [vmem:[#allocation2 + $0x8] sm:$0xff] %vm596_vm0, %v594_v42 }
 0x15e   :  { %611 = dma.vmem_to_hbm [thread:$0]  %s604_s30, 256, %s606_s8, [#allocation3], %s929_s9, %s929_s9, %s930_s10  }
 0x15f   :  { %926 = dma.done.wait [#allocation3], 256  }
 0x160   :  { %927 = vsyncadd [#allocation3], 4294967040 }
 0x161   :  { %616 = vsyncpa [#allocation3], 1 }

</bundles_post_ra>
